<compile_context>
chip_gen: v7x
topology: tpu7x:2x2x1
jax: 0.10.0
libtpu: 0.0.40
codegen_flags: <defaults>
</compile_context>

<pallas_src>
import numpy as np

import jax
import jax.numpy as jnp
from jax.experimental import pallas as pl
from jax.experimental.pallas import tpu as pltpu

# Module hyper-parameters (config)
MSA_CHANNEL = 32          # msa_channel
NUM_CHANNEL = 32          # config.num_channel
NUM_RES_BLOCK = 2         # config.num_residual_block
NUM_ANGLE_OUT = 14        # 7 torsion angles * (sin, cos)
GROUP_OUT = 2 * NUM_ANGLE_OUT   # per logical row: [angles(14) | unnormalized(14)]


def _round_up(x, m):
    return ((x + m - 1) // m) * m


def _cdiv(a, b):
    return -(-a // b)


def _default_pack():
    """Row-packing factor: 8 on 256-deep-MXU chips (v6e / v7x), else 4."""
    try:
        kind = jax.devices()[0].device_kind.lower()
    except Exception:
        return 4
    if "v6" in kind or "v7" in kind or "7x" in kind:
        return 8
    return 4


def _group_constants(P, out_w):
    """Pair-sum matrix + bias, block-diagonalized for P packed rows and padded
    to out_w lanes.  Columns 0..13 of each 28-lane group get the per-(sin,cos)
    sum of squares; columns 14..27 and all padding lanes get exactly 1.0 so the
    single rsqrt*mul leaves the unnormalized half (and padding) unscaled."""
    pair28 = np.zeros((GROUP_OUT, GROUP_OUT), np.float32)
    for j in range(NUM_ANGLE_OUT):
        base = 2 * (j // 2)
        pair28[base, j] = 1.0
        pair28[base + 1, j] = 1.0
    bias28 = np.zeros((1, GROUP_OUT), np.float32)
    bias28[0, NUM_ANGLE_OUT:] = 1.0

    pair = np.kron(np.eye(P, dtype=np.float32), pair28)      # (P*28, P*28)
    bias = np.tile(bias28, (1, P))                            # (1, P*28)

    pad = out_w - P * GROUP_OUT
    pair = np.pad(pair, ((0, pad), (0, pad)))
    bias = np.pad(bias, ((0, 0), (0, pad)), constant_values=1.0)
    return jnp.asarray(pair), jnp.asarray(bias)


def _sidechain_kernel(r1_ref, r2_ref,
                      w_in_ref, b_in_ref,
                      wr1_ref, br1_ref, wr2_ref, br2_ref,
                      w_ang_ref, b_ang_ref,
                      pair_ref, pair_bias_ref,
                      out_ref):
    f32 = jnp.float32
    mm_dtype = w_in_ref.dtype        # bf16 operands, f32 accumulation

    # Fused input projection: concat the two ReLU'd reps along lanes and hit
    # the stacked block-diagonal weight with one MXU pass (biases pre-folded).
    r = jnp.concatenate(
        [jnp.maximum(r1_ref[...], 0.0), jnp.maximum(r2_ref[...], 0.0)],
        axis=-1).astype(mm_dtype)
    act = jnp.dot(r, w_in_ref[...], preferred_element_type=f32) + b_in_ref[...]

    # Residual blocks (small static unroll).
    for b in range(NUM_RES_BLOCK):
        old_act = act
        h = jnp.dot(jnp.maximum(act, 0.0).astype(mm_dtype), wr1_ref[b],
                    preferred_element_type=f32) + br1_ref[b]
        h = jnp.dot(jnp.maximum(h, 0.0).astype(mm_dtype), wr2_ref[b],
                    preferred_element_type=f32) + br2_ref[b]
        act = h + old_act

    # Packed angle projection: per 28-lane group both halves hold the
    # unnormalized sin/cos (weights duplicated wrapper-side), padding lanes 0.
    u2 = jnp.dot(jnp.maximum(act, 0.0).astype(mm_dtype), w_ang_ref[...],
                 preferred_element_type=f32) + b_ang_ref[...]

    # Per-(sin,cos)-pair sum of squares via a tiny constant matmul (kept f32);
    # duplicate / padding lanes get exactly 1.0 so one rsqrt*mul emits
    # [angles | unnormalized] in a single lane-dense store.
    sq = u2 * u2
    pair_sumsq = jnp.dot(sq, pair_ref[...],
                         preferred_element_type=f32) + pair_bias_ref[...]
    inv = jax.lax.rsqrt(jnp.maximum(pair_sumsq, 1e-12))
    out_ref[...] = u2 * inv


def multi_rigid_sidechain(rep1, rep2, params, *, tm_rows=4096, pack=None,
                          use_bf16=True):
    """rep1, rep2: [B, N, MSA_CHANNEL] float32. Returns dict of outputs."""
    B, N, cin = rep1.shape
    assert cin == MSA_CHANNEL
    M = B * N

    P = int(pack) if pack is not None else _default_pack()
    lane_in = P * cin                          # packed activation lane width
    out_w = _round_up(P * GROUP_OUT, 128)      # lane-dense packed output width

    # Pack P logical rows per lane-row; keep packed rows a multiple of 8
    # (sublanes), so at most 8*P-1 rows of padding are ever added.
    M_req = _round_up(M, 8 * P)
    r1 = rep1.reshape(M, cin)
    r2 = rep2.reshape(M, cin)
    if M_req != M:
        pad = ((0, M_req - M), (0, 0))
        r1 = jnp.pad(r1, pad)
        r2 = jnp.pad(r2, pad)
    Mp = M_req // P
    r1p = r1.reshape(Mp, lane_in)              # contiguous reshape: free
    r2p = r2.reshape(Mp, lane_in)

    # ---- one-time parameter prep (wrapper side) --------------------------
    mm_dtype = jnp.bfloat16 if use_bf16 else jnp.float32
    eyeP = jnp.eye(P, dtype=jnp.float32)

    def bdiag(w):
        return jnp.kron(eyeP, w.astype(jnp.float32))

    # Fused input projection weight [2*lane_in, lane_in] and folded bias.
    w_in = jnp.concatenate([bdiag(params['w_in1']), bdiag(params['w_in2'])],
                           axis=0).astype(mm_dtype)
    b_in = jnp.tile(params['b_in1'] + params['b_in2'], (1, P))            # f32

    wr1 = jnp.stack([bdiag(params['wr1'][b]) for b in range(NUM_RES_BLOCK)])
    wr2 = jnp.stack([bdiag(params['wr2'][b]) for b in range(NUM_RES_BLOCK)])
    wr1 = wr1.astype(mm_dtype)
    wr2 = wr2.astype(mm_dtype)
    br1 = jnp.tile(params['br1'], (1, 1, P))                              # f32
    br2 = jnp.tile(params['br2'], (1, 1, P))

    # Angle projection duplicated along lanes ([unnorm | unnorm] per group)
    # and zero-padded to the lane-dense output width.
    w_ang28 = jnp.concatenate([params['w_ang'], params['w_ang']], axis=1)
    b_ang28 = jnp.concatenate([params['b_ang'], params['b_ang']], axis=1)
    col_pad = out_w - P * GROUP_OUT
    w_ang = jnp.pad(bdiag(w_ang28), ((0, 0), (0, col_pad))).astype(mm_dtype)
    b_ang = jnp.pad(jnp.tile(b_ang28, (1, P)), ((0, 0), (0, col_pad)))    # f32

    pair_mat, pair_bias = _group_constants(P, out_w)                      # f32

    # ---- tiling -----------------------------------------------------------
    tm_goal = max(8, (tm_rows // P) // 8 * 8)
    # cap so the grid has >=2 steps when possible (v7x has 2 TensorCores)
    tm_p = max(8, min(tm_goal, _round_up(_cdiv(Mp, 2), 8), Mp))
    grid = (_cdiv(Mp, tm_p),)

    def row_spec(width):
        return pl.BlockSpec((tm_p, width), lambda i: (i, 0))

    def full_spec(a):
        nd = a.ndim
        return pl.BlockSpec(a.shape, lambda i, _nd=nd: (0,) * _nd)

    flops = 2 * M_req * (6 * cin * NUM_CHANNEL
                         + NUM_CHANNEL * NUM_ANGLE_OUT + 2 * NUM_ANGLE_OUT)
    bytes_accessed = 4 * (M_req * (2 * cin + GROUP_OUT)
                          + 6 * cin * NUM_CHANNEL + NUM_CHANNEL * NUM_ANGLE_OUT)
    cost = pl.CostEstimate(flops=flops,
                           transcendentals=M_req * NUM_ANGLE_OUT,
                           bytes_accessed=bytes_accessed)

    packed = pl.pallas_call(
        _sidechain_kernel,
        grid=grid,
        in_specs=[
            row_spec(lane_in), row_spec(lane_in),
            full_spec(w_in), full_spec(b_in),
            full_spec(wr1), full_spec(br1), full_spec(wr2), full_spec(br2),
            full_spec(w_ang), full_spec(b_ang),
            full_spec(pair_mat), full_spec(pair_bias),
        ],
        out_specs=row_spec(out_w),
        out_shape=jax.ShapeDtypeStruct((Mp, out_w), jnp.float32),
        compiler_params=pltpu.CompilerParams(
            dimension_semantics=("parallel",)),
        cost_estimate=cost,
    )(r1p, r2p, w_in, b_in, wr1, br1, wr2, br2, w_ang, b_ang,
      pair_mat, pair_bias)

    rows = packed[:, :P * GROUP_OUT].reshape(M_req, GROUP_OUT)[:M]
    angles = rows[:, :NUM_ANGLE_OUT].reshape(B, N, 7, 2)
    unnorm = rows[:, NUM_ANGLE_OUT:].reshape(B, N, 7, 2)
    return {
        'angles_sin_cos': angles,
        'unnormalized_angles_sin_cos': unnorm,
    }


def init_params(key):
    """Deterministic synthetic parameters (shapes from the module __init__)."""
    ks = jax.random.split(key, 6)
    p = {
        'w_in1': 0.1 * jax.random.normal(ks[0], (MSA_CHANNEL, NUM_CHANNEL), jnp.float32),
        'b_in1': 0.01 * jnp.ones((1, NUM_CHANNEL), jnp.float32),
        'w_in2': 0.1 * jax.random.normal(ks[1], (MSA_CHANNEL, NUM_CHANNEL), jnp.float32),
        'b_in2': -0.01 * jnp.ones((1, NUM_CHANNEL), jnp.float32),
        'wr1': 0.1 * jax.random.normal(ks[2], (NUM_RES_BLOCK, NUM_CHANNEL, NUM_CHANNEL), jnp.float32),
        'br1': 0.02 * jnp.ones((NUM_RES_BLOCK, 1, NUM_CHANNEL), jnp.float32),
        'wr2': 0.1 * jax.random.normal(ks[3], (NUM_RES_BLOCK, NUM_CHANNEL, NUM_CHANNEL), jnp.float32),
        'br2': 0.0 * jnp.ones((NUM_RES_BLOCK, 1, NUM_CHANNEL), jnp.float32),
        'w_ang': 0.1 * jax.random.normal(ks[4], (NUM_CHANNEL, NUM_ANGLE_OUT), jnp.float32),
        'b_ang': 0.05 * jnp.ones((1, NUM_ANGLE_OUT), jnp.float32),
    }
    return p


def ref_forward(rep1, rep2, p, matmul_dtype=jnp.float32):
    """Pure-JAX reference of the PyTorch forward hot path.  `matmul_dtype`
    lets the reference mirror the kernel's bf16-operand / f32-accumulate
    matmuls (the normalization epilogue stays f32 either way)."""
    def mm(x, w):
        return jnp.dot(x.astype(matmul_dtype), w.astype(matmul_dtype),
                       preferred_element_type=jnp.float32)

    act = (mm(jnp.maximum(rep1, 0.0), p['w_in1']) + p['b_in1'][0]
           + mm(jnp.maximum(rep2, 0.0), p['w_in2']) + p['b_in2'][0])
    for b in range(NUM_RES_BLOCK):
        old = act
        h = mm(jnp.maximum(act, 0.0), p['wr1'][b]) + p['br1'][b, 0]
        h = mm(jnp.maximum(h, 0.0), p['wr2'][b]) + p['br2'][b, 0]
        act = h + old
    u = mm(jnp.maximum(act, 0.0), p['w_ang']) + p['b_ang'][0]
    B, N = rep1.shape[:2]
    u4 = u.reshape(B, N, 7, 2)
    ang = u4 / jnp.sqrt(jnp.clip(jnp.sum(u4.astype(jnp.float32) ** 2, -1,
                                         keepdims=True), 1e-12, None))
    return ang, u4


if __name__ == "__main__":
    key = jax.random.PRNGKey(0)
    kp, k1, k2, ka = jax.random.split(key, 4)

    batch, num_res = 2, 32
    params = init_params(kp)
    rep1 = jax.random.normal(k1, (batch, num_res, MSA_CHANNEL), jnp.float32)
    rep2 = jax.random.normal(k2, (batch, num_res, MSA_CHANNEL), jnp.float32)
    # aatype / affine would only feed the untranslated geometric tail.
    aatype = jax.random.randint(ka, (batch, num_res), 0, 20)  # unused (see TODO)

    outputs = multi_rigid_sidechain(rep1, rep2, params)
    jax.block_until_ready(outputs)

    # (1) Tight check against a reference mirroring the kernel numerics
    #     (bf16 matmul operands, f32 accumulation, f32 epilogue).
    mir_ang, mir_un = ref_forward(rep1, rep2, params, matmul_dtype=jnp.bfloat16)
    assert jnp.allclose(outputs['unnormalized_angles_sin_cos'], mir_un,
                        atol=2e-3, rtol=2e-3)
    assert jnp.allclose(outputs['angles_sin_cos'], mir_ang,
                        atol=2e-2, rtol=2e-2)

    # (2) Self-consistency: the angles output must be the l2-normalization of
    #     the unnormalized output (checks grouping / packed-output layout).
    ker_un = outputs['unnormalized_angles_sin_cos']
    renorm = ker_un / jnp.sqrt(jnp.clip(jnp.sum(ker_un ** 2, -1, keepdims=True),
                                        1e-12, None))
    assert jnp.allclose(outputs['angles_sin_cos'], renorm, atol=1e-2, rtol=1e-2)

    # (3) Looser semantic check against the full-f32 reference (bf16 operand
    #     rounding is the only difference).
    f32_ang, f32_un = ref_forward(rep1, rep2, params)
    assert jnp.allclose(outputs['unnormalized_angles_sin_cos'], f32_un,
                        atol=2e-2, rtol=2e-2)

    print("KERNEL_OK")
</pallas_src>

<mosaic_0001>
module attributes {stable_mosaic.version = 11 : i64} {
  func.func @_sidechain_kernel(%arg0: i32, %arg1: memref<8x128xf32, #tpu.memory_space<vmem>>, %arg2: memref<8x128xf32, #tpu.memory_space<vmem>>, %arg3: memref<256x128xbf16, #tpu.memory_space<vmem>>, %arg4: memref<1x128xf32, #tpu.memory_space<vmem>>, %arg5: memref<2x128x128xbf16, #tpu.memory_space<vmem>>, %arg6: memref<2x1x128xf32, #tpu.memory_space<vmem>>, %arg7: memref<2x128x128xbf16, #tpu.memory_space<vmem>>, %arg8: memref<2x1x128xf32, #tpu.memory_space<vmem>>, %arg9: memref<128x128xbf16, #tpu.memory_space<vmem>>, %arg10: memref<1x128xf32, #tpu.memory_space<vmem>>, %arg11: memref<128x128xf32, #tpu.memory_space<vmem>>, %arg12: memref<1x128xf32, #tpu.memory_space<vmem>>, %arg13: memref<8x128xf32, #tpu.memory_space<vmem>>) attributes {dimension_semantics = [#tpu.dimension_semantics<parallel>], iteration_bounds = array<i64: 2>, scalar_prefetch = 0 : i64, scratch_operands = 0 : i64, tpu.core_type = #tpu.core_type<tc>, window_params = [{transform_indices = @transform_0, window_bounds = array<i64: 8, 128>}, {transform_indices = @transform_1, window_bounds = array<i64: 8, 128>}, {pipeline_mode = #tpu.pipeline_mode<synchronous>, transform_indices = @transform_2, window_bounds = array<i64: 256, 128>}, {pipeline_mode = #tpu.pipeline_mode<synchronous>, transform_indices = @transform_3, window_bounds = array<i64: 1, 128>}, {pipeline_mode = #tpu.pipeline_mode<synchronous>, transform_indices = @transform_4, window_bounds = array<i64: 2, 128, 128>}, {pipeline_mode = #tpu.pipeline_mode<synchronous>, transform_indices = @transform_5, window_bounds = array<i64: 2, 1, 128>}, {pipeline_mode = #tpu.pipeline_mode<synchronous>, transform_indices = @transform_6, window_bounds = array<i64: 2, 128, 128>}, {pipeline_mode = #tpu.pipeline_mode<synchronous>, transform_indices = @transform_7, window_bounds = array<i64: 2, 1, 128>}, {pipeline_mode = #tpu.pipeline_mode<synchronous>, transform_indices = @transform_8, window_bounds = array<i64: 128, 128>}, {pipeline_mode = #tpu.pipeline_mode<synchronous>, transform_indices = @transform_9, window_bounds = array<i64: 1, 128>}, {pipeline_mode = #tpu.pipeline_mode<synchronous>, transform_indices = @transform_10, window_bounds = array<i64: 128, 128>}, {pipeline_mode = #tpu.pipeline_mode<synchronous>, transform_indices = @transform_11, window_bounds = array<i64: 1, 128>}, {transform_indices = @transform_12, window_bounds = array<i64: 8, 128>}]} {
    %c0 = arith.constant 0 : index
    %c0_0 = arith.constant 0 : index
    %0 = vector.load %arg1[%c0, %c0_0] : memref<8x128xf32, #tpu.memory_space<vmem>>, vector<8x128xf32>
    %cst = arith.constant 0.000000e+00 : f32
    %1 = vector.broadcast %cst : f32 to vector<8x128xf32>
    %2 = arith.maximumf %0, %1 : vector<8x128xf32>
    %c0_1 = arith.constant 0 : index
    %c0_2 = arith.constant 0 : index
    %3 = vector.load %arg2[%c0_1, %c0_2] : memref<8x128xf32, #tpu.memory_space<vmem>>, vector<8x128xf32>
    %cst_3 = arith.constant 0.000000e+00 : f32
    %4 = vector.broadcast %cst_3 : f32 to vector<8x128xf32>
    %5 = arith.maximumf %3, %4 : vector<8x128xf32>
    %6 = tpu.concatenate %2, %5 in 1 : vector<8x128xf32>, vector<8x128xf32> -> vector<8x256xf32>
    %7 = arith.truncf %6 : vector<8x256xf32> to vector<8x256xbf16>
    %c0_4 = arith.constant 0 : index
    %c0_5 = arith.constant 0 : index
    %8 = vector.load %arg3[%c0_4, %c0_5] : memref<256x128xbf16, #tpu.memory_space<vmem>>, vector<256x128xbf16>
    %cst_6 = arith.constant dense<0.000000e+00> : vector<8x128xf32>
    %9 = tpu.matmul %7, %8, %cst_6 {dimension_numbers = #tpu.dot_dimension_numbers<[1], [0], [0], [1], [0, 0, 1, 1], [], []>} : vector<8x256xbf16>, vector<256x128xbf16>, vector<8x128xf32> -> vector<8x128xf32>
    %c0_7 = arith.constant 0 : index
    %c0_8 = arith.constant 0 : index
    %10 = vector.load %arg4[%c0_7, %c0_8] : memref<1x128xf32, #tpu.memory_space<vmem>>, vector<1x128xf32>
    %11 = vector.broadcast %10 : vector<1x128xf32> to vector<8x128xf32>
    %12 = arith.addf %9, %11 : vector<8x128xf32>
    %cst_9 = arith.constant 0.000000e+00 : f32
    %13 = vector.broadcast %cst_9 : f32 to vector<8x128xf32>
    %14 = arith.maximumf %12, %13 : vector<8x128xf32>
    %15 = arith.truncf %14 : vector<8x128xf32> to vector<8x128xbf16>
    %c0_10 = arith.constant 0 : index
    %c0_11 = arith.constant 0 : index
    %c0_12 = arith.constant 0 : index
    %16 = vector.load %arg5[%c0_10, %c0_11, %c0_12] : memref<2x128x128xbf16, #tpu.memory_space<vmem>>, vector<1x128x128xbf16>
    %17 = vector.shape_cast %16 : vector<1x128x128xbf16> to vector<128x128xbf16>
    %cst_13 = arith.constant dense<0.000000e+00> : vector<8x128xf32>
    %18 = tpu.matmul %15, %17, %cst_13 {dimension_numbers = #tpu.dot_dimension_numbers<[1], [0], [0], [1], [0, 0, 1, 1], [], []>} : vector<8x128xbf16>, vector<128x128xbf16>, vector<8x128xf32> -> vector<8x128xf32>
    %c0_14 = arith.constant 0 : index
    %c0_15 = arith.constant 0 : index
    %c0_16 = arith.constant 0 : index
    %19 = vector.load %arg6[%c0_14, %c0_15, %c0_16] : memref<2x1x128xf32, #tpu.memory_space<vmem>>, vector<1x1x128xf32>
    %20 = vector.shape_cast %19 : vector<1x1x128xf32> to vector<1x128xf32>
    %21 = vector.broadcast %20 : vector<1x128xf32> to vector<8x128xf32>
    %22 = arith.addf %18, %21 : vector<8x128xf32>
    %cst_17 = arith.constant 0.000000e+00 : f32
    %23 = vector.broadcast %cst_17 : f32 to vector<8x128xf32>
    %24 = arith.maximumf %22, %23 : vector<8x128xf32>
    %25 = arith.truncf %24 : vector<8x128xf32> to vector<8x128xbf16>
    %c0_18 = arith.constant 0 : index
    %c0_19 = arith.constant 0 : index
    %c0_20 = arith.constant 0 : index
    %26 = vector.load %arg7[%c0_18, %c0_19, %c0_20] : memref<2x128x128xbf16, #tpu.memory_space<vmem>>, vector<1x128x128xbf16>
    %27 = vector.shape_cast %26 : vector<1x128x128xbf16> to vector<128x128xbf16>
    %cst_21 = arith.constant dense<0.000000e+00> : vector<8x128xf32>
    %28 = tpu.matmul %25, %27, %cst_21 {dimension_numbers = #tpu.dot_dimension_numbers<[1], [0], [0], [1], [0, 0, 1, 1], [], []>} : vector<8x128xbf16>, vector<128x128xbf16>, vector<8x128xf32> -> vector<8x128xf32>
    %c0_22 = arith.constant 0 : index
    %c0_23 = arith.constant 0 : index
    %c0_24 = arith.constant 0 : index
    %29 = vector.load %arg8[%c0_22, %c0_23, %c0_24] : memref<2x1x128xf32, #tpu.memory_space<vmem>>, vector<1x1x128xf32>
    %30 = vector.shape_cast %29 : vector<1x1x128xf32> to vector<1x128xf32>
    %31 = vector.broadcast %30 : vector<1x128xf32> to vector<8x128xf32>
    %32 = arith.addf %28, %31 : vector<8x128xf32>
    %33 = arith.addf %32, %12 : vector<8x128xf32>
    %cst_25 = arith.constant 0.000000e+00 : f32
    %34 = vector.broadcast %cst_25 : f32 to vector<8x128xf32>
    %35 = arith.maximumf %33, %34 : vector<8x128xf32>
    %36 = arith.truncf %35 : vector<8x128xf32> to vector<8x128xbf16>
    %c1 = arith.constant 1 : index
    %c0_26 = arith.constant 0 : index
    %c0_27 = arith.constant 0 : index
    %37 = vector.load %arg5[%c1, %c0_26, %c0_27] : memref<2x128x128xbf16, #tpu.memory_space<vmem>>, vector<1x128x128xbf16>
    %38 = vector.shape_cast %37 : vector<1x128x128xbf16> to vector<128x128xbf16>
    %cst_28 = arith.constant dense<0.000000e+00> : vector<8x128xf32>
    %39 = tpu.matmul %36, %38, %cst_28 {dimension_numbers = #tpu.dot_dimension_numbers<[1], [0], [0], [1], [0, 0, 1, 1], [], []>} : vector<8x128xbf16>, vector<128x128xbf16>, vector<8x128xf32> -> vector<8x128xf32>
    %c1_29 = arith.constant 1 : index
    %c0_30 = arith.constant 0 : index
    %c0_31 = arith.constant 0 : index
    %40 = vector.load %arg6[%c1_29, %c0_30, %c0_31] : memref<2x1x128xf32, #tpu.memory_space<vmem>>, vector<1x1x128xf32>
    %41 = vector.shape_cast %40 : vector<1x1x128xf32> to vector<1x128xf32>
    %42 = vector.broadcast %41 : vector<1x128xf32> to vector<8x128xf32>
    %43 = arith.addf %39, %42 : vector<8x128xf32>
    %cst_32 = arith.constant 0.000000e+00 : f32
    %44 = vector.broadcast %cst_32 : f32 to vector<8x128xf32>
    %45 = arith.maximumf %43, %44 : vector<8x128xf32>
    %46 = arith.truncf %45 : vector<8x128xf32> to vector<8x128xbf16>
    %c1_33 = arith.constant 1 : index
    %c0_34 = arith.constant 0 : index
    %c0_35 = arith.constant 0 : index
    %47 = vector.load %arg7[%c1_33, %c0_34, %c0_35] : memref<2x128x128xbf16, #tpu.memory_space<vmem>>, vector<1x128x128xbf16>
    %48 = vector.shape_cast %47 : vector<1x128x128xbf16> to vector<128x128xbf16>
    %cst_36 = arith.constant dense<0.000000e+00> : vector<8x128xf32>
    %49 = tpu.matmul %46, %48, %cst_36 {dimension_numbers = #tpu.dot_dimension_numbers<[1], [0], [0], [1], [0, 0, 1, 1], [], []>} : vector<8x128xbf16>, vector<128x128xbf16>, vector<8x128xf32> -> vector<8x128xf32>
    %c1_37 = arith.constant 1 : index
    %c0_38 = arith.constant 0 : index
    %c0_39 = arith.constant 0 : index
    %50 = vector.load %arg8[%c1_37, %c0_38, %c0_39] : memref<2x1x128xf32, #tpu.memory_space<vmem>>, vector<1x1x128xf32>
    %51 = vector.shape_cast %50 : vector<1x1x128xf32> to vector<1x128xf32>
    %52 = vector.broadcast %51 : vector<1x128xf32> to vector<8x128xf32>
    %53 = arith.addf %49, %52 : vector<8x128xf32>
    %54 = arith.addf %53, %33 : vector<8x128xf32>
    %cst_40 = arith.constant 0.000000e+00 : f32
    %55 = vector.broadcast %cst_40 : f32 to vector<8x128xf32>
    %56 = arith.maximumf %54, %55 : vector<8x128xf32>
    %57 = arith.truncf %56 : vector<8x128xf32> to vector<8x128xbf16>
    %c0_41 = arith.constant 0 : index
    %c0_42 = arith.constant 0 : index
    %58 = vector.load %arg9[%c0_41, %c0_42] : memref<128x128xbf16, #tpu.memory_space<vmem>>, vector<128x128xbf16>
    %cst_43 = arith.constant dense<0.000000e+00> : vector<8x128xf32>
    %59 = tpu.matmul %57, %58, %cst_43 {dimension_numbers = #tpu.dot_dimension_numbers<[1], [0], [0], [1], [0, 0, 1, 1], [], []>} : vector<8x128xbf16>, vector<128x128xbf16>, vector<8x128xf32> -> vector<8x128xf32>
    %c0_44 = arith.constant 0 : index
    %c0_45 = arith.constant 0 : index
    %60 = vector.load %arg10[%c0_44, %c0_45] : memref<1x128xf32, #tpu.memory_space<vmem>>, vector<1x128xf32>
    %61 = vector.broadcast %60 : vector<1x128xf32> to vector<8x128xf32>
    %62 = arith.addf %59, %61 : vector<8x128xf32>
    %63 = arith.mulf %62, %62 : vector<8x128xf32>
    %c0_46 = arith.constant 0 : index
    %c0_47 = arith.constant 0 : index
    %64 = vector.load %arg11[%c0_46, %c0_47] : memref<128x128xf32, #tpu.memory_space<vmem>>, vector<128x128xf32>
    %cst_48 = arith.constant dense<0.000000e+00> : vector<8x128xf32>
    %65 = tpu.matmul %63, %64, %cst_48 {dimension_numbers = #tpu.dot_dimension_numbers<[1], [0], [0], [1], [0, 0, 1, 1], [], []>} : vector<8x128xf32>, vector<128x128xf32>, vector<8x128xf32> -> vector<8x128xf32>
    %c0_49 = arith.constant 0 : index
    %c0_50 = arith.constant 0 : index
    %66 = vector.load %arg12[%c0_49, %c0_50] : memref<1x128xf32, #tpu.memory_space<vmem>>, vector<1x128xf32>
    %67 = vector.broadcast %66 : vector<1x128xf32> to vector<8x128xf32>
    %68 = arith.addf %65, %67 : vector<8x128xf32>
    %cst_51 = arith.constant 9.99999996E-13 : f32
    %69 = vector.broadcast %cst_51 : f32 to vector<8x128xf32>
    %70 = arith.maximumf %68, %69 : vector<8x128xf32>
    %71 = math.rsqrt %70 : vector<8x128xf32>
    %72 = arith.mulf %62, %71 : vector<8x128xf32>
    %c0_52 = arith.constant 0 : index
    %c0_53 = arith.constant 0 : index
    %73 = vector.load %arg13[%c0_52, %c0_53] : memref<8x128xf32, #tpu.memory_space<vmem>>, vector<8x128xf32>
    tpu.vector_store %arg13[%c0_52, %c0_53], %72 {strides = array<i32>} : memref<8x128xf32, #tpu.memory_space<vmem>>, vector<8x128xf32>,
    return
  }
  func.func @transform_0(%arg0: i32) -> (i32, i32) {
    %c0_i32 = arith.constant 0 : i32
    %c0_i32_0 = arith.constant 0 : i32
    return %arg0, %c0_i32 : i32, i32
  }
  func.func @transform_1(%arg0: i32) -> (i32, i32) {
    %c0_i32 = arith.constant 0 : i32
    %c0_i32_0 = arith.constant 0 : i32
    return %arg0, %c0_i32 : i32, i32
  }
  func.func @transform_2(%arg0: i32) -> (i32, i32) {
    %c0_i32 = arith.constant 0 : i32
    %c0_i32_0 = arith.constant 0 : i32
    %c0_i32_1 = arith.constant 0 : i32
    return %c0_i32, %c0_i32_0 : i32, i32
  }
  func.func @transform_3(%arg0: i32) -> (i32, i32) {
    %c0_i32 = arith.constant 0 : i32
    %c0_i32_0 = arith.constant 0 : i32
    %c0_i32_1 = arith.constant 0 : i32
    return %c0_i32, %c0_i32_0 : i32, i32
  }
  func.func @transform_4(%arg0: i32) -> (i32, i32, i32) {
    %c0_i32 = arith.constant 0 : i32
    %c0_i32_0 = arith.constant 0 : i32
    %c0_i32_1 = arith.constant 0 : i32
    %c0_i32_2 = arith.constant 0 : i32
    return %c0_i32, %c0_i32_0, %c0_i32_1 : i32, i32, i32
  }
  func.func @transform_5(%arg0: i32) -> (i32, i32, i32) {
    %c0_i32 = arith.constant 0 : i32
    %c0_i32_0 = arith.constant 0 : i32
    %c0_i32_1 = arith.constant 0 : i32
    %c0_i32_2 = arith.constant 0 : i32
    return %c0_i32, %c0_i32_0, %c0_i32_1 : i32, i32, i32
  }
  func.func @transform_6(%arg0: i32) -> (i32, i32, i32) {
    %c0_i32 = arith.constant 0 : i32
    %c0_i32_0 = arith.constant 0 : i32
    %c0_i32_1 = arith.constant 0 : i32
    %c0_i32_2 = arith.constant 0 : i32
    return %c0_i32, %c0_i32_0, %c0_i32_1 : i32, i32, i32
  }
  func.func @transform_7(%arg0: i32) -> (i32, i32, i32) {
    %c0_i32 = arith.constant 0 : i32
    %c0_i32_0 = arith.constant 0 : i32
    %c0_i32_1 = arith.constant 0 : i32
    %c0_i32_2 = arith.constant 0 : i32
    return %c0_i32, %c0_i32_0, %c0_i32_1 : i32, i32, i32
  }
  func.func @transform_8(%arg0: i32) -> (i32, i32) {
    %c0_i32 = arith.constant 0 : i32
    %c0_i32_0 = arith.constant 0 : i32
    %c0_i32_1 = arith.constant 0 : i32
    return %c0_i32, %c0_i32_0 : i32, i32
  }
  func.func @transform_9(%arg0: i32) -> (i32, i32) {
    %c0_i32 = arith.constant 0 : i32
    %c0_i32_0 = arith.constant 0 : i32
    %c0_i32_1 = arith.constant 0 : i32
    return %c0_i32, %c0_i32_0 : i32, i32
  }
  func.func @transform_10(%arg0: i32) -> (i32, i32) {
    %c0_i32 = arith.constant 0 : i32
    %c0_i32_0 = arith.constant 0 : i32
    %c0_i32_1 = arith.constant 0 : i32
    return %c0_i32, %c0_i32_0 : i32, i32
  }
  func.func @transform_11(%arg0: i32) -> (i32, i32) {
    %c0_i32 = arith.constant 0 : i32
    %c0_i32_0 = arith.constant 0 : i32
    %c0_i32_1 = arith.constant 0 : i32
    return %c0_i32, %c0_i32_0 : i32, i32
  }
  func.func @transform_12(%arg0: i32) -> (i32, i32) {
    %c0_i32 = arith.constant 0 : i32
    %c0_i32_0 = arith.constant 0 : i32
    return %arg0, %c0_i32 : i32, i32
  }
}

</mosaic_0001>

<bundles_post_ra>
// kernel: tpu_custom_call.1
= control target key start
LH: loop header
LB: loop body
LE: loop exit
PB: predicated region body
PF: predicated region fallthrough
CT: control target
= control target key end

     0   :  { %s2839_s0 = inlined_call_operand.hbm [shape: f32[16,128], index: 0, kind: input, shape index: {}]   ;;  %s2840_s1 = inlined_call_operand.hbm [shape: f32[16,128], index: 1, kind: input, shape index: {}]   ;;  %s2841_s2 = inlined_call_operand.hbm [shape: bf16[256,128], index: 2, kind: input, shape index: {}]   ;;  %s2842_s3 = inlined_call_operand.vmem [shape: f32[1,128], index: 3, kind: input, shape index: {}]   ;;  %s2843_s4 = inlined_call_operand.hbm [shape: bf16[2,128,128], index: 4, kind: input, shape index: {}]   ;;  %s2844_s5 = inlined_call_operand.vmem [shape: f32[2,1,128], index: 5, kind: input, shape index: {}]   ;;  %s2845_s6 = inlined_call_operand.hbm [shape: bf16[2,128,128], index: 6, kind: input, shape index: {}]   ;;  %s2846_s7 = inlined_call_operand.vmem [shape: f32[2,1,128], index: 7, kind: input, shape index: {}]   ;;  %s2847_s8 = inlined_call_operand.hbm [shape: bf16[128,128], index: 8, kind: input, shape index: {}]   ;;  %s2848_s9 = inlined_call_operand.vmem [shape: f32[1,128], index: 9, kind: input, shape index: {}]   ;;  %s2849_s10 = inlined_call_operand.hbm [shape: f32[128,128], index: 10, kind: input, shape index: {}]   ;;  %s2850_s11 = inlined_call_operand.vmem [shape: f32[1,128], index: 11, kind: input, shape index: {}]   ;;  %s2851_s12 = inlined_call_operand.hbm [shape: f32[16,128], index: 12, kind: output, shape index: {}]  }
   0x1   :  { %2858 = sst [smem:[#allocation21_spill]] %s2841_s2 }
   0x2   :  { %2859 = sst [smem:[#allocation22_spill]] %s2843_s4 }
   0x3   :  { %2860 = sst [smem:[#allocation23_spill]] %s2845_s6 }
   0x4   :  { %2861 = sst [smem:[#allocation24_spill]] %s2846_s7 }
   0x5   :  { %2862 = sst [smem:[#allocation25_spill]] %s2847_s8 }
   0x6   :  { %2863 = sst [smem:[#allocation26_spill]] %s2848_s9 }
   0x7   :  { %2864 = sst [smem:[#allocation27_spill]] %s2849_s10 }
   0x8   :  { %2865 = sst [smem:[#allocation28_spill]] %s2850_s11 }
   0x9   :  { %2866 = sst [smem:[#allocation29_spill]] %s2851_s12 }
   0xa   :  { %17 = vsyncpa [#allocation3], 0 }
   0xb   :  { %19 = vsyncpa [#allocation3 + $0x1], 0 }
   0xc   :  { %20 = vsyncpa [#allocation6], 0 }
   0xd   :  { %22 = vsyncpa [#allocation6 + $0x1], 0 }
   0xe   :  { %23 = vsyncpa [#allocation9], 0 }
   0xf   :  { %24 = vsyncpa [#allocation12], 0 }
  0x10   :  { %25 = vsyncpa [#allocation4], 0 }
  0x11   :  { %27 = vsyncpa [#allocation4 + $0x1], 0  ;;  %s2407_s21 = smov 0   ;;  %s2409_s22 = smov 0  }
  0x12   :  { %s2411_s23 = smov 0   ;;  %s2413_s24 = smov 0  }
  0x13 LB: > { %s2327_s25 = smov [#allocation7]   ;;  %s2428_s27 = sadd.s32 4294967295, %s2325_s24   ;;  %s2325_s24 = sphi %s2413_s24, %s2898_s24   ;;  %s2321_s23 = sphi %s2411_s23, %s2897_s23   ;;  %s2317_s22 = sphi %s2409_s22, %s2896_s22   ;;  %s2313_s21 = sphi %s2407_s21, %s2895_s21  }
  0x14   : > { %s338_s26 = sshll.u32 %s2327_s25, 4  ;;  %p1544_p0 = scmp.ge.s32.totalorder %s2325_s24, 1  ;;  %s2433_s26 = int_to_ptr.vmem [resolvable:$true] %s338_s26 }
  0x15   : > { %p2854_p1 = scmp.eq.s32.totalorder %s2428_s27, 0  ;;  %p326_p2 = scmp.lt.s32.totalorder %s2325_s24, 3 }
  0x16   : > { %s2328_s29 = smov [#allocation8]   ;;  %s2329_s14 = smov [#allocation11]  }
  0x17   : > { %p2435_p3 = pnand %p1544_p0, %p326_p2  ;;  %s354_s30 = sshll.u32 %s2328_s29, 4  ;;  %s2448_s30 = int_to_ptr.vmem [resolvable:$true] %s354_s30 }
  0x18   : > { %s386_s15 = sshll.u32 %s2329_s14, 4  ;;  %s2869_s2 = sld [smem:[#allocation21_spill]]  ;;  %s2450_s15 = int_to_ptr.vmem [resolvable:$true] %s386_s15 }
  0x19   : > { %s2867_s28 = scalar_select %p2435_p3, 1, 0 }
  0x1a   : > { %p1902_p5 = pneg %p2435_p3 }
  0x1c   : > { %p2444_p6 = pnand %p1902_p5, %p2854_p1 }
  0x1e   : > { %s2043_s18 = scalar_lea.hbm %s2869_s2, 2048  ;;  %p2460_p8 = pneg %p2444_p6 }
  0x1f   : > { %p2044_p7 = scmp.ne.s32.totalorder %s2869_s2, %s2043_s18  ;;  %p2050_p11 = scmp.lt.u32.totalorder %s2043_s18, %s2869_s2 }
  0x21   : > { %p2046_p9 = pnand %p2460_p8, %p2044_p7 }
  0x23   : > { %p2047_p10 = pneg %p2046_p9 }
  0x25   : > { %p2052_p12 = pnand %p2050_p11, %p2047_p10 }
  0x27   : > { %2055 = shalt.err (!%p2052_p12)
}
  0x28   : > { %s2056_s16 = scalar_lea.vmem %s2433_s26, 2048  ;;  %p2064_p5 = scmp.lt.s32.totalorder %s2433_s26, %s2433_s26 }
  0x29   : > { %p2057_p13 = scmp.ne.s32.totalorder %s2433_s26, %s2056_s16  ;;  %p2065_p4 = scmp.lt.s32.totalorder %s2056_s16, %s2056_s16 }
  0x2b   : > { %p2059_p0 = pnand %p2057_p13, %p2460_p8  ;;  %p2066_p7 = por %p2065_p4, %p2064_p5 }
  0x2d   : > { %p2060_p2 = pneg %p2059_p0 }
  0x2f   : > { %p2067_p9 = pnand %p2066_p7, %p2060_p2 }
  0x31   : > { %2070 = shalt.err (!%p2067_p9)
}
  0x32   : > { %s2330_s17 = smov 64   ;;  %s2331_s18 = smov 4  }
  0x33   : > { %1905 = dma.hbm_to_vmem [thread:$0]  (!%p2444_p6), %s2869_s2, 2048, %s2433_s26, [#allocation6], %s2330_s17, %s2330_s17, %s2331_s18  }
  0x34   : > { %s2871_s4 = sld [smem:[#allocation22_spill]] }
  0x3a   : > { %s2071_s16 = scalar_lea.hbm %s2871_s4, 2048 }
  0x3b   : > { %p2072_p4 = scmp.ne.s32.totalorder %s2871_s4, %s2071_s16  ;;  %p2078_p12 = scmp.lt.u32.totalorder %s2071_s16, %s2871_s4 }
  0x3d   : > { %p2074_p10 = pnand %p2072_p4, %p2460_p8 }
  0x3f   : > { %p2075_p11 = pneg %p2074_p10 }
  0x41   : > { %p2080_p13 = pnand %p2078_p12, %p2075_p11 }
  0x43   : > { %2083 = shalt.err (!%p2080_p13)
}
  0x44   : > { %s2084_s26 = scalar_lea.vmem %s2448_s30, 2048  ;;  %p2092_p7 = scmp.lt.s32.totalorder %s2448_s30, %s2448_s30 }
  0x45   : > { %p2085_p0 = scmp.ne.s32.totalorder %s2448_s30, %s2084_s26  ;;  %p2093_p9 = scmp.lt.s32.totalorder %s2084_s26, %s2084_s26 }
  0x47   : > { %p2087_p2 = pnand %p2085_p0, %p2460_p8  ;;  %p2094_p4 = por %p2093_p9, %p2092_p7 }
  0x49   : > { %p2088_p5 = pneg %p2087_p2 }
  0x4b   : > { %p2095_p10 = pnand %p2094_p4, %p2088_p5 }
  0x4d   : > { %2098 = shalt.err (!%p2095_p10)
}
  0x4e   : > { %1908 = dma.hbm_to_vmem [thread:$0]  (!%p2444_p6), %s2871_s4, 2048, %s2448_s30, [#allocation9], %s2330_s17, %s2330_s17, %s2331_s18  }
  0x4f   : > { %s2872_s8 = sld [smem:[#allocation25_spill]] }
  0x55   : > { %s2099_s19 = scalar_lea.hbm %s2872_s8, 1024 }
  0x56   : > { %p2100_p11 = scmp.ne.s32.totalorder %s2872_s8, %s2099_s19  ;;  %p2106_p0 = scmp.lt.u32.totalorder %s2099_s19, %s2872_s8 }
  0x58   : > { %p2102_p12 = pnand %p2100_p11, %p2460_p8 }
  0x5a   : > { %p2103_p13 = pneg %p2102_p12 }
  0x5c   : > { %p2108_p2 = pnand %p2106_p0, %p2103_p13 }
  0x5e   : > { %2111 = shalt.err (!%p2108_p2)
}
  0x5f   : > { %s2112_s30 = scalar_lea.vmem %s2450_s15, 1024  ;;  %p2120_p4 = scmp.lt.s32.totalorder %s2450_s15, %s2450_s15 }
  0x60   : > { %p2113_p5 = scmp.ne.s32.totalorder %s2450_s15, %s2112_s30  ;;  %p2121_p10 = scmp.lt.s32.totalorder %s2112_s30, %s2112_s30 }
  0x62   : > { %p2115_p7 = pnand %p2113_p5, %p2460_p8  ;;  %p2122_p11 = por %p2121_p10, %p2120_p4 }
  0x64   : > { %p2116_p9 = pneg %p2115_p7 }
  0x66   : > { %p2123_p12 = pnand %p2122_p11, %p2116_p9 }
  0x68   : > { %2126 = shalt.err (!%p2123_p12)
}
  0x69   : > { %1914 = dma.hbm_to_vmem [thread:$0]  (!%p2444_p6), %s2872_s8, 1024, %s2450_s15, [#allocation12], %s2330_s17, %s2330_s17, %s2331_s18  }
  0x6a   : > { %s2332_s9 = smov [#allocation10]   ;;  %s2333_s12 = smov [#allocation13]  }
  0x6b   : > { %s370_s11 = sshll.u32 %s2332_s9, 4  ;;  %s402_s19 = sshll.u32 %s2333_s12, 4  ;;  %s371_s11 = int_to_ptr.vmem [resolvable:$true] %s370_s11  ;;  %s403_s19 = int_to_ptr.vmem [resolvable:$true] %s402_s19 }
  0x6c   : > { %s2873_s6 = sld [smem:[#allocation23_spill]] }
  0x72   : > { %s2127_s14 = scalar_lea.hbm %s2873_s6, 2048 }
  0x73   : > { %p2128_p13 = scmp.ne.s32.totalorder %s2873_s6, %s2127_s14  ;;  %p2134_p5 = scmp.lt.u32.totalorder %s2127_s14, %s2873_s6 }
  0x75   : > { %p2130_p0 = pnand %p2128_p13, %p2460_p8 }
  0x77   : > { %p2131_p2 = pneg %p2130_p0 }
  0x79   : > { %p2136_p7 = pnand %p2134_p5, %p2131_p2 }
  0x7b   : > { %2139 = shalt.err (!%p2136_p7)
}
  0x7c   : > { %s2140_s15 = scalar_lea.vmem %s371_s11, 2048  ;;  %p2148_p11 = scmp.lt.s32.totalorder %s371_s11, %s371_s11 }
  0x7d   : > { %p2141_p9 = scmp.ne.s32.totalorder %s371_s11, %s2140_s15  ;;  %p2149_p12 = scmp.lt.s32.totalorder %s2140_s15, %s2140_s15 }
  0x7f   : > { %p2143_p4 = pnand %p2141_p9, %p2460_p8  ;;  %p2150_p1 = por %p2149_p12, %p2148_p11 }
  0x81   : > { %p2144_p10 = pneg %p2143_p4 }
  0x83   : > { %p2151_p3 = pnand %p2150_p1, %p2144_p10 }
  0x85   : > { %2154 = shalt.err (!%p2151_p3)
}
  0x86   : > { %1911 = dma.hbm_to_vmem [thread:$0]  (!%p2444_p6), %s2873_s6, 2048, %s371_s11, [#allocation9], %s2330_s17, %s2330_s17, %s2331_s18  }
  0x87   : > { %s2874_s10 = sld [smem:[#allocation27_spill]] }
  0x8d   : > { %s2155_s20 = scalar_lea.hbm %s2874_s10, 2048 }
  0x8e   : > { %p2156_p1 = scmp.ne.s32.totalorder %s2874_s10, %s2155_s20  ;;  %p2162_p0 = scmp.lt.u32.totalorder %s2155_s20, %s2874_s10 }
  0x90   : > { %p2158_p3 = pnand %p2156_p1, %p2460_p8 }
  0x92   : > { %p2159_p13 = pneg %p2158_p3 }
  0x94   : > { %p2164_p2 = pnand %p2162_p0, %p2159_p13 }
  0x96   : > { %2167 = shalt.err (!%p2164_p2)
}
  0x97   : > { %s2168_s26 = scalar_lea.vmem %s403_s19, 2048  ;;  %p2176_p4 = scmp.lt.s32.totalorder %s403_s19, %s403_s19 }
  0x98   : > { %p2169_p5 = scmp.ne.s32.totalorder %s403_s19, %s2168_s26  ;;  %p2177_p10 = scmp.lt.s32.totalorder %s2168_s26, %s2168_s26 }
  0x9a   : > { %p2171_p7 = pnand %p2169_p5, %p2460_p8  ;;  %p2178_p11 = por %p2177_p10, %p2176_p4 }
  0x9c   : > { %p2172_p9 = pneg %p2171_p7 }
  0x9e   : > { %p2179_p12 = pnand %p2178_p11, %p2172_p9 }
  0xa0   : > { %2182 = shalt.err (!%p2179_p12)
}
  0xa1   : > { %s2334_s17 = smov 128   ;;  %s2335_s25 = smov 8  }
  0xa2   : > { %1917 = dma.hbm_to_vmem [thread:$0]  (!%p2444_p6), %s2874_s10, 2048, %s403_s19, [#allocation12], %s2334_s17, %s2334_s17, %s2335_s25  }
  0xa3   : > { %s1543_s15 = sadd.s32 4294967294, %s2325_s24   ;;  %s2577_s2 = sadd.s32 1, %s2325_s24  }
  0xa4   : > { %s40_s7 = sadd.s32 1, %s2321_s23  ;;  %s37_s9 = ssub.s32 %s2325_s24, %s2577_s2 }
  0xa5   : > { %p47_p8 = scmp.ne.s32.totalorder %s2321_s23, %s2317_s22  ;;  %p38_p1 = scmp.eq.s32.totalorder %s37_s9, 0 }
  0xa6   : > { %p48_p3 = scmp.eq.s32.totalorder %s2325_s24, 0  ;;  %p53_p13 = scmp.ne.s32.totalorder %s2317_s22, %s2313_s21 }
  0xa7   : > { %p313_p0 = scmp.eq.s32.totalorder %s2428_s27, 1  ;;  %p2875_p5 = scmp.eq.s32.totalorder %s2428_s27, 0 }
  0xa8   : > { %s2589_s12 = scalar_select %p38_p1, %s2321_s23, %s40_s7  }
  0xa9   : > { %p49_p2 = por %p48_p3, %p47_p8  ;;  %p2593_p7 = por %p2875_p5, %p53_p13 }
  0xaa   : > { %p2597_p6 = por %p313_p0, %p47_p8  ;;  %p319_p9 = scmp.eq.s32.totalorder %s1543_s15, 1 }
  0xab   : > { %s2876_s13 = scalar_select %p2593_p7, 1, 0 }
  0xac   : > { %s2877_s19 = scalar_select %p2597_p6, 1, 0 }
  0xad   : > { %p1934_p4 = scmp.lt.s32.totalorder %s2325_s24, 2  ;;  %s419_s20 = sand.u32 1, %s2321_s23  }
  0xae   : > { %p2603_p10 = por %p319_p9, %p53_p13  ;;  %s2607_s14 = sshll.u32 %s419_s20, 3 }
  0xaf   : > { %s1552_s16 = sshll.u32 %s2325_s24, 7  ;;  %s423_s25 = scalar_lea.vmem [#allocation2], %s2607_s14 }
  0xb0   : > { %s2878_s29 = scalar_select %p2603_p10, 1, 0 }
  0xb1   : > { %s2613_s17 = scalar_lea.hbm %s2839_s0, %s1552_s16  ;;  %s430_s18 = sshll.u32 %s423_s25, 4  ;;  %s2620_s18 = int_to_ptr.vmem [resolvable:$true] %s430_s18 }
  0xb2   : > { %p2616_p11 = pnand %p1934_p4, %p49_p2  ;;  %s2625_s9 = scalar_lea.hbm %s2840_s1, %s1552_s16 }
  0xb3   : > { %s420_s30 = scalar_lea.sflag [#allocation3], %s419_s20  ;;  %s2183_s26 = scalar_lea.hbm %s2613_s17, 128 }
  0xb4   : > { %p2184_p12 = scmp.ne.s32.totalorder %s2613_s17, %s2183_s26  ;;  %p2185_p8 = pneg %p2616_p11 }
  0xb5   : > { %s2188_s6 = scalar_lea.hbm %s2839_s0, 256  ;;  %p2189_p13 = scmp.lt.u32.totalorder %s2613_s17, %s2839_s0 }
  0xb6   : > { %p2186_p1 = pnand %p2185_p8, %p2184_p12  ;;  %p2190_p0 = scmp.lt.u32.totalorder %s2188_s6, %s2183_s26 }
  0xb7   : > { %p2192_p5 = scmp.lt.u32.totalorder %s2183_s26, %s2613_s17 }
  0xb8   : > { %p2187_p3 = pneg %p2186_p1  ;;  %p2191_p2 = por %p2190_p0, %p2189_p13 }
  0xba   : > { %p2193_p9 = por %p2192_p5, %p2191_p2 }
  0xbc   : > { %p2194_p4 = pnand %p2193_p9, %p2187_p3 }
  0xbe   : > { %2197 = shalt.err (!%p2194_p4)
}
  0xbf   : > { %s2198_s20 = scalar_lea.vmem %s2620_s18, 128  ;;  %s2336_s4 = smov [#allocation2]  }
  0xc0   : > { %p2199_p12 = scmp.ne.s32.totalorder %s2620_s18, %s2198_s20  ;;  %s2203_s16 = sshll.u32 %s2336_s4, 4  ;;  %s2204_s16 = int_to_ptr.vmem [resolvable:$false] %s2203_s16 }
  0xc1   : > { %s2205_s8 = scalar_lea.vmem %s2204_s16, 256  ;;  %p2206_p6 = scmp.lt.s32.totalorder %s2620_s18, %s2204_s16 }
  0xc2   : > { %p2201_p1 = pnand %p2199_p12, %p2185_p8  ;;  %p2207_p13 = scmp.lt.s32.totalorder %s2205_s8, %s2198_s20 }
  0xc4   : > { %p2202_p10 = pneg %p2201_p1  ;;  %p2208_p0 = por %p2207_p13, %p2206_p6 }
  0xc6   : > { %p2209_p2 = pnand %p2208_p0, %p2202_p10 }
  0xc8   : > { %2212 = shalt.err (!%p2209_p2)
}
  0xc9   : > { %1921 = dma.hbm_to_vmem [thread:$0]  (!%p2616_p11), %s2613_s17, 128, %s2620_s18, %s420_s30  }
  0xca   : > { %s437_s6 = sand.u32 1, %s2325_s24   ;;  %s441_s10 = scalar_lea.vmem [#allocation5], %s2607_s14 }
  0xcb   : > { %s448_s15 = sshll.u32 %s441_s10, 4  ;;  %s438_s7 = scalar_lea.sflag [#allocation6], %s437_s6  ;;  %s449_s15 = int_to_ptr.vmem [resolvable:$true] %s448_s15 }
  0xcc   : > { %s2213_s26 = scalar_lea.hbm %s2625_s9, 128  ;;  %s2218_s4 = scalar_lea.hbm %s2840_s1, 256 }
  0xcd   : > { %p2214_p6 = scmp.ne.s32.totalorder %s2625_s9, %s2213_s26  ;;  %p2219_p5 = scmp.lt.u32.totalorder %s2625_s9, %s2840_s1 }
  0xce   : > { %p2220_p9 = scmp.lt.u32.totalorder %s2218_s4, %s2213_s26  ;;  %p2222_p12 = scmp.lt.u32.totalorder %s2213_s26, %s2625_s9 }
  0xcf   : > { %p2216_p10 = pnand %p2214_p6, %p2185_p8 }
  0xd0   : > { %p2221_p4 = por %p2220_p9, %p2219_p5 }
  0xd1   : > { %p2217_p3 = pneg %p2216_p10 }
  0xd2   : > { %p2223_p1 = por %p2222_p12, %p2221_p4 }
  0xd4   : > { %p2224_p13 = pnand %p2223_p1, %p2217_p3 }
  0xd6   : > { %2227 = shalt.err (!%p2224_p13)
}
  0xd7   : > { %s2228_s14 = scalar_lea.vmem %s449_s15, 128  ;;  %s2337_s17 = smov [#allocation5]  }
  0xd8   : > { %p2229_p0 = scmp.ne.s32.totalorder %s449_s15, %s2228_s14  ;;  %s2233_s18 = sshll.u32 %s2337_s17, 4  ;;  %s2234_s18 = int_to_ptr.vmem [resolvable:$false] %s2233_s18 }
  0xd9   : > { %s2235_s30 = scalar_lea.vmem %s2234_s18, 256  ;;  %p2236_p10 = scmp.lt.s32.totalorder %s449_s15, %s2234_s18 }
  0xda   : > { %p2231_p2 = pnand %p2229_p0, %p2185_p8  ;;  %p2237_p7 = scmp.lt.s32.totalorder %s2235_s30, %s2228_s14 }
  0xdc   : > { %p2232_p6 = pneg %p2231_p2  ;;  %p2238_p5 = por %p2237_p7, %p2236_p10 }
  0xde   : > { %p2239_p9 = pnand %p2238_p5, %p2232_p6 }
  0xe0   : > { %2242 = shalt.err (!%p2239_p9)
}
  0xe1   : > { %1924 = dma.hbm_to_vmem [thread:$0]  (!%p2616_p11), %s2625_s9, 128, %s449_s15, %s438_s7  }
  0xe2   : > { %p2880_p3 = scmp.ne.s32.totalorder %s2867_s28, 0 }
  0xe3   : > { %s2676_s6 = sand.u32 (!%p2880_p3), 1, %s2317_s22   ;;  %p2881_p7 = scmp.ne.s32.totalorder (!%p2880_p3), %s2876_s13, 0 }
  0xe4   : > { %457 = sbr.rel (%p2880_p3) target bundleno = 1838 (0x72e), region = 68  ;;  %s2679_s10 = sshll.u32 (!%p2880_p3), %s2676_s6, 3 }
  0xe5   : > { %s460_s26 = scalar_lea.sflag (!%p2880_p3), [#allocation3], %s2676_s6  ;;  %s463_s25 = scalar_lea.vmem (!%p2880_p3), [#allocation2], %s2679_s10 }
  0xeb   : > { %2288 = dma.done.wait (%p2881_p7), %s460_s26, 128  }
  0xec   : > { %2290 = vsyncadd (%p2881_p7), %s460_s26, 4294967168  ;;  %s468_s28 = sand.u32 1, %s2428_s27   ;;  %s472_s9 = scalar_lea.vmem [#allocation5], %s2679_s10 }
  0xed   : > { %s469_s11 = scalar_lea.sflag [#allocation6], %s468_s28 }
  0xee   : > { %2292 = dma.done.wait (%p2881_p7), %s469_s11, 128  }
  0xef   : > { %2294 = vsyncadd (%p2881_p7), %s469_s11, 4294967168  ;;  %p2882_p11 = scmp.eq.s32.totalorder %s2428_s27, 0 }
  0xf1   : > { %2296 = dma.done.wait (%p2882_p11), [#allocation6], 2048   ;;  %p2883_p8 = pmov %p2882_p11 }
  0xf3   : > { %2298 = vsyncadd (%p2883_p8), [#allocation6], 4294965248  ;;  %p2884_p4 = pmov %p2883_p8 }
  0xf5   : > { %2300 = dma.done.wait (%p2884_p4), [#allocation9], 4096   ;;  %p2885_p12 = pmov %p2884_p4 }
  0xf6   : > { %p2886_p1 = pmov %p2884_p4 }
  0xf7   : > { %2302 = vsyncadd (%p2885_p12), [#allocation9], 4294963200 }
  0xf8   : > { %2304 = dma.done.wait (%p2886_p1), [#allocation12], 3072   ;;  %p2887_p13 = pmov %p2886_p1 }
  0xf9   : > { %v2338_v0 = vmov 0.0   ;;  %v1985_v1 = vld [vmem:[#allocation7 + $0x40] sm:$0xff]   ;;  %v1987_v3 = vld [vmem:[#allocation7 + $0x48] sm:$0xff]   ;;  %v1989_v5 = vld [vmem:[#allocation7 + $0x50] sm:$0xff]   ;;  %vm2339_vm0 = vmmov 0   ;;  %s2888_s8 = sld [smem:[#allocation24_spill]] }
  0xfa   : > { %2306 = vsyncadd (%p2887_p13), [#allocation12], 4294964224  ;;  %1717 = vmatprep.subr.bf16.mxu1 %v2338_v0  ;;  %v1986_v2 = vld [vmem:[#allocation7] sm:$0xff]   ;;  %1633 = vmatprep.subr.bf16.mxu0 %v1985_v1  ;;  %v1988_v4 = vld [vmem:[#allocation7 + $0x8] sm:$0xff]   ;;  %s2889_s28 = sld [smem:[#allocation26_spill]]  ;;  %s2890_s13 = sld [smem:[#allocation28_spill]] }
  0xfb   : > { %1634 = vmatpush3.bf16.msra.mxu0 %v1986_v2  ;;  %v1990_v6 = vld [vmem:[#allocation7 + $0x10] sm:$0xff]   ;;  %v1991_v7 = vld [vmem:[#allocation7 + $0x58] sm:$0xff]   ;;  %v1993_v9 = vld [vmem:[#allocation7 + $0x60] sm:$0xff]   ;;  %1733 = vmatprep.mubr.msk.bf16.mxu1 %vm2339_vm0, %v2338_v0  ;;  %s1630_s15 = sshll.u32 %s2428_s27, 7  ;;  %s537_s7 = scalar_lea.vmem [#allocation14], %s2679_s10 }
  0xfc   : > { %1635 = vmatprep.subr.bf16.mxu0 %v1987_v3  ;;  %v1992_v8 = vld [vmem:[#allocation7 + $0x18] sm:$0xff]   ;;  %v1994_v10 = vld [vmem:[#allocation7 + $0x20] sm:$0xff]   ;;  %v1995_v11 = vld [vmem:[#allocation7 + $0x68] sm:$0xff]   ;;  %s1403_s20 = sshll.u32 %s537_s7, 4  ;;  %s2891_s14 = sld [smem:[#allocation29_spill]]  ;;  %s2797_s20 = int_to_ptr.vmem [resolvable:$true] %s1403_s20 }
  0xfd   : > { %v541_v12 = vld [vmem:[%s472_s9] sm:$0xff]  ;;  %v1996_v13 = vld [vmem:[#allocation7 + $0x28] sm:$0xff]   ;;  %v2001_v16 = vld [vmem:[#allocation8] sm:$0xff]   ;;  %s1390_s18 = scalar_lea.sflag [#allocation4], %s2676_s6  ;;  %s2243_s30 = scalar_lea.vmem %s2797_s20, 128 }
  0xfe   : > { %v542_v14 = vmax.f32 %v541_v12, 0.0  ;;  %v539_v15 = vld [vmem:[%s463_s25] sm:$0xff]  ;;  %1718 = vmatpush3.bf16.msra.mxu1 %v2001_v16  ;;  %v1997_v19 = vld [vmem:[#allocation7 + $0x70] sm:$0xff]   ;;  %v1999_v21 = vld [vmem:[#allocation7 + $0x78] sm:$0xff]   ;;  %p2244_p0 = scmp.ne.s32.totalorder %s2797_s20, %s2243_s30  ;;  %p2892_p2 = scmp.ne.s32.totalorder %s2877_s19, 0 }
  0xff   : > { %1636 = vmatpush3.bf16.msra.mxu0 %v1988_v4  ;;  %v2002_v18 = vld [vmem:[#allocation8 + $0x8] sm:$0xff]   ;;  %1719 = vmatprep.subr.bf16.mxu1 %v2338_v0  ;;  %v1998_v20 = vld [vmem:[#allocation7 + $0x30] sm:$0xff]   ;;  %v540_v22 = vmax.f32 %v539_v15, 0.0  ;;  %v2000_v24 = vld [vmem:[#allocation7 + $0x38] sm:$0xff]   ;;  %s2341_s27 = smov [#allocation14]  }
 0x100   : > { %1637 = vmatprep.subr.bf16.mxu0 %v1989_v5  ;;  %v544_v17 = vpack.c.bf16 %v542_v14, %v542_v14  ;;  %v2003_v23 = vld [vmem:[#allocation8 + $0x10] sm:$0xff]   ;;  %v2004_v25 = vld [vmem:[#allocation8 + $0x18] sm:$0xff]   ;;  %v2005_v26 = vld [vmem:[#allocation8 + $0x20] sm:$0xff]   ;;  %p2245_p6 = pnand %p2244_p0, %p2892_p2  ;;  %s2247_s10 = sshll.u32 %s2341_s27, 4  ;;  %s2248_s10 = int_to_ptr.vmem [resolvable:$false] %s2247_s10 }
 0x101   : > { %v543_v27 = vpack.c.bf16 %v540_v22, %v540_v22  ;;  %v2006_v28 = vld [vmem:[#allocation8 + $0x28] sm:$0xff]   ;;  %v2007_v29 = vld [vmem:[#allocation8 + $0x30] sm:$0xff]   ;;  %v2008_v30 = vld [vmem:[#allocation8 + $0x38] sm:$0xff]   ;;  %s2249_s26 = scalar_lea.vmem %s2248_s10, 256  ;;  %p2250_p5 = scmp.lt.s32.totalorder %s2797_s20, %s2248_s10 }
 0x102   : > { %712 = vmatprep.mubr.bf16.mxu0 %v544_v17  ;;  %1720 = vmatpush3.bf16.msra.mxu1 %v2002_v18  ;;  %v2009_v31 = vld [vmem:[#allocation10] sm:$0xff]   ;;  %v2010_v32 = vld [vmem:[#allocation10 + $0x8] sm:$0xff]   ;;  %v2011_v33 = vld [vmem:[#allocation10 + $0x10] sm:$0xff]   ;;  %s2795_s17 = scalar_lea.hbm %s2891_s14, %s1630_s15  ;;  %p2246_p10 = pneg %p2245_p6 }
 0x103   : > { %1638 = vmatpush3.bf16.msra.mxu0 %v1990_v6  ;;  %1721 = vmatprep.subr.bf16.mxu1 %v2338_v0  ;;  %v2012_v34 = vld [vmem:[#allocation10 + $0x18] sm:$0xff]   ;;  %v2013_v35 = vld [vmem:[#allocation10 + $0x20] sm:$0xff]   ;;  %v2014_v36 = vld [vmem:[#allocation10 + $0x28] sm:$0xff]   ;;  %p2251_p9 = scmp.lt.s32.totalorder %s2249_s26, %s2243_s30 }
 0x104   : > { %1639 = vmatprep.subr.bf16.mxu0 %v1991_v7  ;;  %v1564_v38 = vld [vmem:[%s2842_s3] ss:$0 sm:$0xff]  ;;  %v2015_v46 = vld [vmem:[#allocation10 + $0x30] sm:$0xff]   ;;  %v2016_v47 = vld [vmem:[#allocation10 + $0x38] sm:$0xff]  }
 0x105   : > { %v2017_v48 = vld [vmem:[#allocation8 + $0x40] sm:$0xff]   ;;  %v2018_v49 = vld [vmem:[#allocation8 + $0x48] sm:$0xff]   ;;  %v2019_v50 = vld [vmem:[#allocation8 + $0x50] sm:$0xff]   ;;  %p2252_p3 = por %p2251_p9, %p2250_p5 }
 0x106   : > { %1722 = vmatpush3.bf16.msra.mxu1 %v2003_v23  ;;  %v2020_v51 = vld [vmem:[#allocation8 + $0x58] sm:$0xff]   ;;  %v2021_v52 = vld [vmem:[#allocation8 + $0x60] sm:$0xff]   ;;  %v2022_v53 = vld [vmem:[#allocation8 + $0x68] sm:$0xff]  }
 0x107   : > { %1640 = vmatpush3.bf16.msra.mxu0 %v1992_v8  ;;  %1723 = vmatprep.subr.bf16.mxu1 %v2338_v0  ;;  %v1581_v54 = vld [vmem:[%s2844_s5] ss:$0 sm:$0xff]  ;;  %v2023_v62 = vld [vmem:[#allocation8 + $0x70] sm:$0xff]   ;;  %v2024_v63 = vld [vmem:[#allocation8 + $0x78] sm:$0xff]   ;;  %p2253_p7 = pnand %p2252_p3, %p2246_p10 }
 0x108   : > { %1641 = vmatprep.subr.bf16.mxu0 %v1993_v9  ;;  %v2025_v1 = vld [vmem:[#allocation10 + $0x40] sm:$0xff]   ;;  %v2026_v2 = vld [vmem:[#allocation10 + $0x48] sm:$0xff]   ;;  %v2027_v3 = vld [vmem:[#allocation10 + $0x50] sm:$0xff]  }
 0x109   : > { %v2028_v4 = vld [vmem:[#allocation10 + $0x58] sm:$0xff]   ;;  %v2029_v5 = vld [vmem:[#allocation10 + $0x60] sm:$0xff]   ;;  %v2030_v6 = vld [vmem:[#allocation10 + $0x68] sm:$0xff]  }
 0x10a   : > { %1724 = vmatpush3.bf16.msra.mxu1 %v2004_v25  ;;  %v1590_v7 = vld [vmem:[%s2888_s8] ss:$0 sm:$0xff]  ;;  %v2031_v16 = vld [vmem:[#allocation10 + $0x70] sm:$0xff]   ;;  %v2032_v17 = vld [vmem:[#allocation10 + $0x78] sm:$0xff]  }
 0x10b   : > { %1642 = vmatpush3.bf16.msra.mxu0 %v1994_v10  ;;  %1725 = vmatprep.subr.bf16.mxu1 %v2338_v0  ;;  %v2033_v18 = vld [vmem:[#allocation11] sm:$0xff]   ;;  %v2038_v23 = vld [vmem:[#allocation11 + $0x28] sm:$0xff]  }
 0x10c   : > { %1643 = vmatprep.subr.bf16.mxu0 %v1995_v11  ;;  %v2037_v22 = vld [vmem:[#allocation11 + $0x20] sm:$0xff]  }
 0x10e   : > { %1726 = vmatpush3.bf16.msra.mxu1 %v2005_v26 }
 0x10f   : > { %1644 = vmatpush3.bf16.msra.mxu0 %v1996_v13  ;;  %1727 = vmatprep.subr.bf16.mxu1 %v2338_v0 }
 0x110   : > { %1645 = vmatprep.subr.bf16.mxu0 %v1997_v19  ;;  %v2034_v19 = vld [vmem:[#allocation11 + $0x8] sm:$0xff]  }
 0x112   : > { %1728 = vmatpush3.bf16.msra.mxu1 %v2006_v28 }
 0x113   : > { %1646 = vmatpush3.bf16.msra.mxu0 %v1998_v20  ;;  %1729 = vmatprep.subr.bf16.mxu1 %v2338_v0  ;;  %v2035_v20 = vld [vmem:[#allocation11 + $0x10] sm:$0xff]  }
 0x114   : > { %1647 = vmatprep.subr.bf16.mxu0 %v1999_v21  ;;  %v2036_v21 = vld [vmem:[#allocation11 + $0x18] sm:$0xff]  }
 0x116   : > { %1730 = vmatpush3.bf16.msra.mxu1 %v2007_v29 }
 0x117   : > { %1648 = vmatpush3.bf16.msra.mxu0 %v2000_v24  ;;  %1731 = vmatprep.subr.bf16.mxu1 %v2338_v0  ;;  %v1600_v24 = vld [vmem:[%s2844_s5 + $0x1] ss:$0 sm:$0xff] }
 0x118   : > { %1737 = vmatprep.subr.bf16.mxu0 %v2338_v0 }
 0x11a   : > { %713 = vmatmul.mubr.bf16.vlgmr.msra.gmra.mrb[0].mxu0 %v543_v27  ;;  %1732 = vmatpush3.bf16.msra.mxu1 %v2008_v30 }
 0x11b   : > { %1753 = vmatprep.mubr.msk.bf16.mxu0 %vm2339_vm0, %v2338_v0  ;;  %1757 = vmatprep.subr.bf16.mxu1 %v2338_v0 }
 0x11c   : > { %1738 = vmatpush3.bf16.msra.mxu0 %v2009_v31 }
 0x11d   : > { %1739 = vmatprep.subr.bf16.mxu0 %v2338_v0 }
 0x120   : > { %1740 = vmatpush3.bf16.msra.mxu0 %v2010_v32  ;;  %v2039_v32 = vld [vmem:[#allocation11 + $0x30] sm:$0xff]  }
 0x121   : > { %1741 = vmatprep.subr.bf16.mxu0 %v2338_v0 }
 0x124   : > { %1742 = vmatpush3.bf16.msra.mxu0 %v2011_v33  ;;  %v2040_v33 = vld [vmem:[#allocation11 + $0x38] sm:$0xff]  }
 0x125   : > { %1743 = vmatprep.subr.bf16.mxu0 %v2338_v0 }
 0x128   : > { %1744 = vmatpush3.bf16.msra.mxu0 %v2012_v34  ;;  %v1292_v34 = vld [vmem:[#allocation13] sm:$0xff] }
 0x129   : > { %1745 = vmatprep.subr.bf16.mxu0 %v2338_v0 }
 0x12c   : > { %1746 = vmatpush3.bf16.msra.mxu0 %v2013_v35  ;;  %v1293_v35 = vld [vmem:[#allocation13 + $0x8] sm:$0xff] }
 0x12d   : > { %1747 = vmatprep.subr.bf16.mxu0 %v2338_v0 }
 0x130   : > { %1748 = vmatpush3.bf16.msra.mxu0 %v2014_v36  ;;  %v1294_v36 = vld [vmem:[#allocation13 + $0x10] sm:$0xff] }
 0x131   : > { %1749 = vmatprep.subr.bf16.mxu0 %v2338_v0 }
 0x134   : > { %1750 = vmatpush3.bf16.msra.mxu0 %v2015_v46  ;;  %v1300_v46 = vld [vmem:[#allocation13 + $0x40] sm:$0xff] }
 0x135   : > { %1751 = vmatprep.subr.bf16.mxu0 %v2338_v0 }
 0x138   : > { %1752 = vmatpush3.bf16.msra.mxu0 %v2016_v47  ;;  %v1301_v47 = vld [vmem:[#allocation13 + $0x48] sm:$0xff] }
 0x139   : > { %1777 = vmatprep.subr.bf16.mxu0 %v2338_v0 }
 0x1ed   : > { %v1649_v37 = vpop.f32.mrb[0].mxu0 }
 0x1ee   : > { %v1650_v39 = vpop.f32.mrb[1].mxu0 }
 0x1ef   : > { %v1651_v40 = vadd.f32 %v1650_v39, %v1649_v37  ;;  %v1652_v41 = vpop.f32.mrb[2].mxu0  ;;  %v2340_v37 = vmov 0.0|0.0   ;;  %v1295_v39 = vld [vmem:[#allocation13 + $0x18] sm:$0xff] }
 0x1f0   : > { %v1653_v42 = vpop.f32.mrb[3].mxu0  ;;  %v1296_v41 = vld [vmem:[#allocation13 + $0x20] sm:$0xff] }
 0x1f1   : > { %v2732_v43 = vadd.f32 %v1651_v40, %v1564_v38  ;;  %v1853_v38 = vpack.c.bf16 %v1293_v35, %v1292_v34  ;;  %v1856_v40 = vpack.c.bf16 %v1295_v39, %v1294_v36  ;;  %v1297_v42 = vld [vmem:[#allocation13 + $0x28] sm:$0xff] }
 0x1f3   : > { %v720_v44 = vmax.f32 %v2732_v43, 0.0 }
 0x1f5   : > { %v721_v45 = vpack.c.bf16 %v720_v44, %v720_v44  ;;  %v1298_v44 = vld [vmem:[#allocation13 + $0x30] sm:$0xff] }
 0x1f7   : > { %1734 = vmatmul.mubr.bf16.vlgmr.msra.gmra.mrb[0].mxu1 %v721_v45  ;;  %v1299_v45 = vld [vmem:[#allocation13 + $0x38] sm:$0xff] }
 0x1f8   : > { %1773 = vmatprep.mubr.msk.bf16.mxu1 %vm2339_vm0, %v2338_v0  ;;  %1758 = vmatpush3.bf16.msra.mxu1 %v2017_v48  ;;  %v1865_v48 = vpack.c.bf16 %v1301_v47, %v1300_v46 }
 0x1f9   : > { %1759 = vmatprep.subr.bf16.mxu1 %v2338_v0 }
 0x1fc   : > { %1760 = vmatpush3.bf16.msra.mxu1 %v2018_v49  ;;  %v1302_v49 = vld [vmem:[#allocation13 + $0x50] sm:$0xff] }
 0x1fd   : > { %1761 = vmatprep.subr.bf16.mxu1 %v2338_v0 }
 0x200   : > { %1762 = vmatpush3.bf16.msra.mxu1 %v2019_v50  ;;  %v1303_v50 = vld [vmem:[#allocation13 + $0x58] sm:$0xff] }
 0x201   : > { %1763 = vmatprep.subr.bf16.mxu1 %v2338_v0 }
 0x204   : > { %1764 = vmatpush3.bf16.msra.mxu1 %v2020_v51  ;;  %v1868_v51 = vpack.c.bf16 %v1303_v50, %v1302_v49 }
 0x205   : > { %1765 = vmatprep.subr.bf16.mxu1 %v2338_v0 }
 0x208   : > { %1766 = vmatpush3.bf16.msra.mxu1 %v2021_v52  ;;  %v1304_v52 = vld [vmem:[#allocation13 + $0x60] sm:$0xff] }
 0x209   : > { %1767 = vmatprep.subr.bf16.mxu1 %v2338_v0 }
 0x20c   : > { %1768 = vmatpush3.bf16.msra.mxu1 %v2022_v53  ;;  %v1305_v53 = vld [vmem:[#allocation13 + $0x68] sm:$0xff] }
 0x20d   : > { %1769 = vmatprep.subr.bf16.mxu1 %v2338_v0 }
 0x210   : > { %1770 = vmatpush3.bf16.msra.mxu1 %v2023_v62 }
 0x211   : > { %1771 = vmatprep.subr.bf16.mxu1 %v2338_v0 }
 0x214   : > { %1772 = vmatpush3.bf16.msra.mxu1 %v2024_v63 }
 0x215   : > { %1797 = vmatprep.subr.bf16.mxu1 %v2338_v0 }
 0x2ca   : > { %v827_v55 = vpop.f32.mrb[0].mxu1 }
 0x2cb   : > { %v828_v56 = vadd.f32 %v1581_v54, %v827_v55  ;;  %v1735_v57 = vpop.f32.mrb[1].mxu1  ;;  %v1871_v54 = vpack.c.bf16 %v1305_v53, %v1304_v52  ;;  %v1610_v55 = vld [vmem:[%s2888_s8 + $0x1] ss:$0 sm:$0xff] }
 0x2cc   : > { %v830_v58 = vpop.f32.mrb[2].mxu1 }
 0x2cd   : > { %v833_v59 = vmax.f32 %v828_v56, 0.0  ;;  %v1736_v60 = vpop.f32.mrb[3].mxu1 }
 0x2cf   : > { %v834_v61 = vpack.c.bf16 %v833_v59, %v833_v59 }
 0x2d1   : > { %1754 = vmatmul.mubr.bf16.vlgmr.msra.gmra.mrb[4].mxu0 %v834_v61 }
 0x2d2   : > { %1793 = vmatprep.mubr.msk.bf16.mxu0 %vm2339_vm0, %v2338_v0  ;;  %1778 = vmatpush3.bf16.msra.mxu0 %v2025_v1  ;;  %v1306_v1 = vld [vmem:[#allocation13 + $0x70] sm:$0xff] }
 0x2d3   : > { %1779 = vmatprep.subr.bf16.mxu0 %v2338_v0 }
 0x2d6   : > { %1780 = vmatpush3.bf16.msra.mxu0 %v2026_v2  ;;  %v1307_v2 = vld [vmem:[#allocation13 + $0x78] sm:$0xff] }
 0x2d7   : > { %1781 = vmatprep.subr.bf16.mxu0 %v2338_v0 }
 0x2da   : > { %1782 = vmatpush3.bf16.msra.mxu0 %v2027_v3  ;;  %v1874_v3 = vpack.c.bf16 %v1307_v2, %v1306_v1 }
 0x2db   : > { %1783 = vmatprep.subr.bf16.mxu0 %v2338_v0 }
 0x2de   : > { %1784 = vmatpush3.bf16.msra.mxu0 %v2028_v4  ;;  %v1619_v4 = vld [vmem:[%s2889_s28] ss:$0 sm:$0xff] }
 0x2df   : > { %1785 = vmatprep.subr.bf16.mxu0 %v2338_v0 }
 0x2e2   : > { %1786 = vmatpush3.bf16.msra.mxu0 %v2029_v5 }
 0x2e3   : > { %1787 = vmatprep.subr.bf16.mxu0 %v2338_v0 }
 0x2e6   : > { %1788 = vmatpush3.bf16.msra.mxu0 %v2030_v6 }
 0x2e7   : > { %1789 = vmatprep.subr.bf16.mxu0 %v2338_v0 }
 0x2ea   : > { %1790 = vmatpush3.bf16.msra.mxu0 %v2031_v16 }
 0x2eb   : > { %1791 = vmatprep.subr.bf16.mxu0 %v2338_v0 }
 0x2ee   : > { %1792 = vmatpush3.bf16.msra.mxu0 %v2032_v17 }
 0x2ef   : > { %1852 = vmatprep.subr.bf16.mxu0 %v2340_v37 }
 0x3a4   : > { %v940_v8 = vpop.f32.mrb[4].mxu0 }
 0x3a5   : > { %v941_v9 = vadd.f32 %v1590_v7, %v940_v8  ;;  %v1755_v10 = vpop.f32.mrb[5].mxu0 }
 0x3a6   : > { %v943_v11 = vpop.f32.mrb[6].mxu0 }
 0x3a7   : > { %v2762_v12 = vadd.f32 %v941_v9, %v2732_v43  ;;  %v1756_v13 = vpop.f32.mrb[7].mxu0  ;;  %v1859_v43 = vpack.c.bf16 %v1297_v42, %v1296_v41  ;;  %v1628_v11 = vld [vmem:[%s2890_s13] ss:$0 sm:$0xff] }
 0x3a9   : > { %v947_v14 = vmax.f32 %v2762_v12, 0.0 }
 0x3ab   : > { %v948_v15 = vpack.c.bf16 %v947_v14, %v947_v14 }
 0x3ad   : > { %1774 = vmatmul.mubr.bf16.vlgmr.msra.gmra.mrb[4].mxu1 %v948_v15 }
 0x3ae   : > { %1813 = vmatprep.mubr.msk.bf16.mxu1 %vm2339_vm0, %v2338_v0  ;;  %1798 = vmatpush3.bf16.msra.mxu1 %v2033_v18 }
 0x3af   : > { %1799 = vmatprep.subr.bf16.mxu1 %v2338_v0 }
 0x3b2   : > { %1800 = vmatpush3.bf16.msra.mxu1 %v2034_v19 }
 0x3b3   : > { %1801 = vmatprep.subr.bf16.mxu1 %v2338_v0 }
 0x3b6   : > { %1802 = vmatpush3.bf16.msra.mxu1 %v2035_v20 }
 0x3b7   : > { %1803 = vmatprep.subr.bf16.mxu1 %v2338_v0 }
 0x3ba   : > { %1804 = vmatpush3.bf16.msra.mxu1 %v2036_v21 }
 0x3bb   : > { %1805 = vmatprep.subr.bf16.mxu1 %v2338_v0 }
 0x3be   : > { %1806 = vmatpush3.bf16.msra.mxu1 %v2037_v22 }
 0x3bf   : > { %1807 = vmatprep.subr.bf16.mxu1 %v2338_v0 }
 0x3c2   : > { %1808 = vmatpush3.bf16.msra.mxu1 %v2038_v23 }
 0x3c3   : > { %1809 = vmatprep.subr.bf16.mxu1 %v2338_v0 }
 0x3c6   : > { %1810 = vmatpush3.bf16.msra.mxu1 %v2039_v32 }
 0x3c7   : > { %1811 = vmatprep.subr.bf16.mxu1 %v2338_v0 }
 0x3ca   : > { %1812 = vmatpush3.bf16.msra.mxu1 %v2040_v33 }
 0x480   : > { %v1056_v25 = vpop.f32.mrb[4].mxu1 }
 0x481   : > { %v1057_v26 = vadd.f32 %v1600_v24, %v1056_v25  ;;  %v1775_v27 = vpop.f32.mrb[5].mxu1 }
 0x482   : > { %v1059_v28 = vpop.f32.mrb[6].mxu1 }
 0x483   : > { %v1062_v29 = vmax.f32 %v1057_v26, 0.0  ;;  %v1776_v30 = vpop.f32.mrb[7].mxu1 }
 0x485   : > { %v1063_v31 = vpack.c.bf16 %v1062_v29, %v1062_v29 }
 0x487   : > { %1794 = vmatmul.mubr.bf16.vlgmr.msra.gmra.mrb[8].mxu0 %v1063_v31 }
 0x488   : > { %1849 = vmatprep.mubr.msk.f32.mxu0 %vm2339_vm0, %v2338_v0  ;;  %1854 = vmatpush3.bf16.msra.mxu0 %v1853_v38  ;;  %v1862_v0 = vpack.c.bf16 %v1299_v45, %v1298_v44 }
 0x489   : > { %1855 = vmatprep.subr.bf16.mxu0 %v2340_v37 }
 0x48c   : > { %1857 = vmatpush3.bf16.msra.mxu0 %v1856_v40 }
 0x48d   : > { %1858 = vmatprep.subr.bf16.mxu0 %v2340_v37 }
 0x490   : > { %1860 = vmatpush3.bf16.msra.mxu0 %v1859_v43 }
 0x491   : > { %1861 = vmatprep.subr.bf16.mxu0 %v2340_v37 }
 0x494   : > { %1863 = vmatpush3.bf16.msra.mxu0 %v1862_v0 }
 0x495   : > { %1864 = vmatprep.subr.bf16.mxu0 %v2340_v37 }
 0x498   : > { %1866 = vmatpush3.bf16.msra.mxu0 %v1865_v48 }
 0x499   : > { %1867 = vmatprep.subr.bf16.mxu0 %v2340_v37 }
 0x49c   : > { %1869 = vmatpush3.bf16.msra.mxu0 %v1868_v51 }
 0x49d   : > { %1870 = vmatprep.subr.bf16.mxu0 %v2340_v37 }
 0x4a0   : > { %1872 = vmatpush3.bf16.msra.mxu0 %v1871_v54 }
 0x4a1   : > { %1873 = vmatprep.subr.bf16.mxu0 %v2340_v37 }
 0x4a4   : > { %1875 = vmatpush3.bf16.msra.mxu0 %v1874_v3 }
 0x55a   : > { %v1171_v56 = vpop.f32.mrb[8].mxu0 }
 0x55b   : > { %v1172_v57 = vadd.f32 %v1610_v55, %v1171_v56  ;;  %v1795_v58 = vpop.f32.mrb[9].mxu0 }
 0x55c   : > { %v1174_v59 = vpop.f32.mrb[10].mxu0 }
 0x55d   : > { %v1177_v60 = vadd.f32 %v1172_v57, %v2762_v12  ;;  %v1796_v61 = vpop.f32.mrb[11].mxu0 }
 0x55f   : > { %v1178_v62 = vmax.f32 %v1177_v60, 0.0 }
 0x561   : > { %v1179_v63 = vpack.c.bf16 %v1178_v62, %v1178_v62 }
 0x563   : > { %1814 = vmatmul.mubr.bf16.vlgmr.msra.gmra.mrb[8].mxu1 %v1179_v63 }
 0x636   : > { %v1285_v5 = vpop.f32.mrb[8].mxu1 }
 0x637   : > { %v1286_v6 = vadd.f32 %v1619_v4, %v1285_v5  ;;  %v1815_v7 = vpop.f32.mrb[9].mxu1 }
 0x638   : > { %v1288_v8 = vpop.f32.mrb[10].mxu1 }
 0x639   : > { %v1291_v9 = vmul.f32 %v1286_v6, %v1286_v6  ;;  %v1816_v10 = vpop.f32.mrb[11].mxu1 }
 0x63b   : > { %1850 = vmatmul.mubr.f32.vlgmr.msra.gmra.mrb[12].mxu0 %v1291_v9 }
 0x70e   : > { %v1381_v12 = vpop.f32.mrb[12].mxu0 }
 0x70f   : > { %v1382_v13 = vadd.f32 %v1628_v11, %v1381_v12  ;;  %v1851_v14 = vpop.f32.mrb[13].mxu0 }
 0x711   : > { %v1385_v15 = vmax.f32 %v1382_v13, 1e-12 }
 0x713   : > { %2041 = vrsqrt.f32 %v1385_v15 }
 0x71d   : > { %v2042_v16 = vpop.eup %2041 }
 0x71e   : > { %v1387_v17 = vmul.f32 %v2042_v16, %v1286_v6 }
 0x720   : > { %1388 = vst [vmem:[%s537_s7] sm:$0xff] %v1387_v17 }
 0x721   : > { %2256 = shalt.err (!%p2253_p7)
}
 0x722   : > { %s2257_s6 = scalar_lea.hbm %s2795_s17, 128  ;;  %s2261_s11 = scalar_lea.hbm %s2891_s14, 256 }
 0x723   : > { %p2258_p11 = scmp.ne.s32.totalorder %s2795_s17, %s2257_s6  ;;  %p2262_p12 = scmp.lt.u32.totalorder %s2795_s17, %s2891_s14 }
 0x724   : > { %p2263_p1 = scmp.lt.u32.totalorder %s2261_s11, %s2257_s6  ;;  %p2265_p0 = scmp.lt.u32.totalorder %s2257_s6, %s2795_s17 }
 0x725   : > { %p2259_p8 = pnand %p2258_p11, %p2892_p2 }
 0x726   : > { %p2264_p13 = por %p2263_p1, %p2262_p12 }
 0x727   : > { %p2260_p4 = pneg %p2259_p8 }
 0x728   : > { %p2266_p6 = por %p2265_p0, %p2264_p13 }
 0x72a   : > { %p2267_p10 = pnand %p2266_p6, %p2260_p4 }
 0x72c   : > { %2270 = shalt.err (!%p2267_p10)
}
 0x72d   : > { %1900 = dma.vmem_to_hbm [thread:$0]  (%p2892_p2), %s2797_s20, 128, %s2795_s17, %s1390_s18  }
 0x72e PF: > { %s1415_s15 = sand.u32 1, %s2313_s21   ;;  %p2893_p5 = scmp.ne.s32.totalorder %s2878_s29, 0 }
 0x72f   : > { %p2894_p9 = scmp.ge.s32.totalorder %s2325_s24, 2  ;;  %s1416_s7 = scalar_lea.sflag [#allocation4], %s1415_s15 }
 0x731   : > { %p1926_p3 = pnand %p2894_p9, %p2893_p5 }
 0x733   : > { %2308 = dma.done.wait (!%p1926_p3), %s1416_s7, 128  }
 0x734   : > { %2310 = vsyncadd (!%p1926_p3), %s1416_s7, 4294967168  ;;  %p30_p7 = scmp.ge.s32.totalorder %s2577_s2, 4   ;;  %s2895_s21 = smov %s2317_s22 }
 0x735   : > { %s2896_s22 = smov %s2321_s23  ;;  %s2897_s23 = smov %s2589_s12 }
 0x736   : > { %s2898_s24 = smov %s2577_s2  ;;  %32 = sbr.rel (!%p30_p7) target bundleno = 19 (0x13), region = 150 }
 0x73d   :  { %1421 = vsyncpa [#allocation3], 1 }
 0x73e   :  { %1423 = vsyncpa [#allocation3 + $0x1], 1 }
 0x73f   :  { %1424 = vsyncpa [#allocation6], 1 }
 0x740   :  { %1426 = vsyncpa [#allocation6 + $0x1], 1 }
 0x741   :  { %1427 = vsyncpa [#allocation9], 1 }
 0x742   :  { %1428 = vsyncpa [#allocation12], 1 }
 0x743   :  { %1429 = vsyncpa [#allocation4], 1 }
 0x744   :  { %1431 = vsyncpa [#allocation4 + $0x1], 1 }

</bundles_post_ra>
